<compile_context>
chip_gen: v5e
topology: v5e:2x2
jax: 0.10.0
libtpu: 0.0.40
codegen_flags: <defaults>
</compile_context>

<pallas_src>
import functools

import jax
import jax.numpy as jnp
from jax.experimental import pallas as pl
from jax.experimental.pallas import tpu as pltpu


def _lmcl_kernel(feat_ref, ncenters_t_ref, label_ref,
                 logits_ref, margin_ref, nfeat_ref, *, s, m, block_c):
    """One (batch-tile, class-tile) grid step of the CosFace forward."""
    j = pl.program_id(1)  # class-tile index (inner, 'arbitrary' axis)

    # Normalize the feature tile once per batch tile and stash it (bf16) in
    # VMEM scratch; reused for every class tile of this batch tile.
    @pl.when(j == 0)
    def _():
        feat = feat_ref[...].astype(jnp.float32)                      # [tb, D]
        # NOTE: matches the PyTorch reference exactly (no eps on the norm).
        inv = jax.lax.rsqrt(jnp.sum(feat * feat, axis=-1, keepdims=True))
        nfeat_ref[...] = (feat * inv).astype(jnp.bfloat16)

    # Cosine logits on the MXU: bf16 x bf16 -> f32, lane-dense on classes.
    logits = jnp.dot(nfeat_ref[...], ncenters_t_ref[...],
                     preferred_element_type=jnp.float32)              # [tb, tc]

    tb, tc = logits_ref.shape
    # Global class ids for this tile (offset by the class-tile index).
    cls_ids = jax.lax.broadcasted_iota(jnp.int32, (tb, tc), 1) + j * block_c
    label = label_ref[...]                                            # [tb, 1]
    onehot_sm = jnp.where(cls_ids == label, s * m, 0.0)  # = s * m * onehot

    logits_ref[...] = logits
    margin_ref[...] = s * logits - onehot_sm             # s * (logits - m*onehot)


def _pick_tile(dim, target, granularity):
    """Largest tile <= target that is a multiple of `granularity` and divides
    `dim`; falls back to the full dimension (always a legal block shape)."""
    if dim <= target:
        return dim
    t = (target // granularity) * granularity
    while t >= granularity:
        if dim % t == 0:
            return t
        t -= granularity
    return dim


def lmcl_forward(feat, centers, label, *, s=7.0, m=0.2,
                 block_b=128, block_c=1024):
    """feat: [B, D] f32, centers: [C, D] f32, label: [B] int.

    Returns (logits, margin_logits), each [B, C] f32.
    """
    batch, feat_dim = feat.shape
    num_classes = centers.shape[0]

    tb = _pick_tile(batch, block_b, 8)
    tc = _pick_tile(num_classes, block_c, 128)
    grid = (batch // tb, num_classes // tc)

    # Centers are parameters: normalize + transpose once in the wrapper and
    # feed the kernel a lane-dense [D, C] bf16 RHS (cacheable across steps).
    c32 = centers.astype(jnp.float32)
    inv_c = jax.lax.rsqrt(jnp.sum(c32 * c32, axis=-1, keepdims=True))
    ncenters_t = (c32 * inv_c).astype(jnp.bfloat16).T                 # [D, C]

    label2d = label.astype(jnp.int32).reshape(batch, 1)

    kernel = functools.partial(_lmcl_kernel, s=float(s), m=float(m), block_c=tc)

    out_shapes = (
        jax.ShapeDtypeStruct((batch, num_classes), jnp.float32),
        jax.ShapeDtypeStruct((batch, num_classes), jnp.float32),
    )

    grid_spec = pltpu.PrefetchScalarGridSpec(
        num_scalar_prefetch=0,
        grid=grid,
        in_specs=[
            pl.BlockSpec((tb, feat_dim), lambda i, j: (i, 0)),   # feat tile
            pl.BlockSpec((feat_dim, tc), lambda i, j: (0, j)),   # centers^T tile
            pl.BlockSpec((tb, 1), lambda i, j: (i, 0)),          # labels tile
        ],
        out_specs=(
            pl.BlockSpec((tb, tc), lambda i, j: (i, j)),
            pl.BlockSpec((tb, tc), lambda i, j: (i, j)),
        ),
        scratch_shapes=[pltpu.VMEM((tb, feat_dim), jnp.bfloat16)],
    )

    return pl.pallas_call(
        kernel,
        out_shape=out_shapes,
        grid_spec=grid_spec,
        compiler_params=pltpu.CompilerParams(
            # batch tiles independent (megacore on v7x); class axis carries
            # the nfeat scratch, so it stays 'arbitrary'.
            dimension_semantics=("parallel", "arbitrary")),
    )(feat, ncenters_t, label2d)


def lmcl_reference(feat, centers, label, *, s=7.0, m=0.2):
    nfeat = feat / jnp.linalg.norm(feat, axis=-1, keepdims=True)
    ncent = centers / jnp.linalg.norm(centers, axis=-1, keepdims=True)
    logits = nfeat @ ncent.T
    onehot = jax.nn.one_hot(label, centers.shape[0], dtype=jnp.float32) * m
    return logits, s * (logits - onehot)


if __name__ == "__main__":
    key = jax.random.PRNGKey(0)

    def run_case(batch, feat_dim, num_classes, block_b, block_c, case_key):
        k_feat, k_cent, k_lab = jax.random.split(case_key, 3)
        feat = jax.random.normal(k_feat, (batch, feat_dim), dtype=jnp.float32)
        centers = jax.random.normal(k_cent, (num_classes, feat_dim),
                                    dtype=jnp.float32)
        label = jax.random.randint(k_lab, (batch,), 0, num_classes,
                                   dtype=jnp.int32)

        logits, margin = lmcl_forward(feat, centers, label, s=7.0, m=0.2,
                                      block_b=block_b, block_c=block_c)
        jax.block_until_ready((logits, margin))

        ref_logits, ref_margin = lmcl_reference(feat, centers, label,
                                                s=7.0, m=0.2)
        # bf16 MXU inputs -> loosened tolerance vs the pure-f32 reference.
        assert jnp.allclose(logits, ref_logits, atol=3e-2, rtol=3e-2), (
            float(jnp.max(jnp.abs(logits - ref_logits))))
        assert jnp.allclose(margin, ref_margin, atol=2e-1, rtol=3e-2), (
            float(jnp.max(jnp.abs(margin - ref_margin))))

    k1, k2 = jax.random.split(key)
    # Tiny shape consistent with the module (single-tile grid).
    run_case(batch=8, feat_dim=32, num_classes=16,
             block_b=128, block_c=1024, case_key=k1)
    # Slightly larger shape that exercises the (batch, class) grid tiling and
    # the class-id offset in the margin one-hot.
    run_case(batch=16, feat_dim=64, num_classes=256,
             block_b=8, block_c=128, case_key=k2)

    print("KERNEL_OK")
</pallas_src>

<mosaic_0001>
module attributes {stable_mosaic.version = 11 : i64} {
  func.func @_lmcl_kernel(%arg0: i32, %arg1: i32, %arg2: memref<8x32xf32, #tpu.memory_space<vmem>>, %arg3: memref<32x16xbf16, #tpu.memory_space<vmem>>, %arg4: memref<8x1xi32, #tpu.memory_space<vmem>>, %arg5: memref<8x16xf32, #tpu.memory_space<vmem>>, %arg6: memref<8x16xf32, #tpu.memory_space<vmem>>, %arg7: memref<8x32xbf16, #tpu.memory_space<vmem>>) attributes {dimension_semantics = [#tpu.dimension_semantics<parallel>, #tpu.dimension_semantics<arbitrary>], iteration_bounds = array<i64: 1, 1>, scalar_prefetch = 0 : i64, scratch_operands = 1 : i64, tpu.core_type = #tpu.core_type<tc>, window_params = [{transform_indices = @transform_0, window_bounds = array<i64: 8, 32>}, {transform_indices = @transform_1, window_bounds = array<i64: 32, 16>}, {transform_indices = @transform_2, window_bounds = array<i64: 8, 1>}, {transform_indices = @transform_3, window_bounds = array<i64: 8, 16>}, {transform_indices = @transform_4, window_bounds = array<i64: 8, 16>}]} {
    %c0_i32 = arith.constant 0 : i32
    %0 = arith.cmpi eq, %arg1, %c0_i32 : i32
    %1 = arith.extui %0 : i1 to i32
    %c0_i32_0 = arith.constant 0 : i32
    %2 = arith.cmpi ne, %1, %c0_i32_0 : i32
    scf.if %2 {
      %c0_13 = arith.constant 0 : index
      %c0_14 = arith.constant 0 : index
      %21 = vector.load %arg2[%c0_13, %c0_14] : memref<8x32xf32, #tpu.memory_space<vmem>>, vector<8x32xf32>
      %22 = arith.mulf %21, %21 : vector<8x32xf32>
      %cst_15 = arith.constant dense<0.000000e+00> : vector<8xf32>
      %23 = vector.multi_reduction <add>, %22, %cst_15 [1] : vector<8x32xf32> to vector<8xf32>
      %24 = vector.shape_cast %23 : vector<8xf32> to vector<8x1xf32>
      %25 = math.rsqrt %24 : vector<8x1xf32>
      %26 = vector.broadcast %25 : vector<8x1xf32> to vector<8x32xf32>
      %27 = arith.mulf %21, %26 : vector<8x32xf32>
      %28 = arith.truncf %27 : vector<8x32xf32> to vector<8x32xbf16>
      %c0_16 = arith.constant 0 : index
      %c0_17 = arith.constant 0 : index
      %29 = vector.load %arg7[%c0_16, %c0_17] : memref<8x32xbf16, #tpu.memory_space<vmem>>, vector<8x32xbf16>
      tpu.vector_store %arg7[%c0_16, %c0_17], %28 {strides = array<i32>} : memref<8x32xbf16, #tpu.memory_space<vmem>>, vector<8x32xbf16>,
    } else {
    }
    %c0 = arith.constant 0 : index
    %c0_1 = arith.constant 0 : index
    %3 = vector.load %arg7[%c0, %c0_1] : memref<8x32xbf16, #tpu.memory_space<vmem>>, vector<8x32xbf16>
    %c0_2 = arith.constant 0 : index
    %c0_3 = arith.constant 0 : index
    %4 = vector.load %arg3[%c0_2, %c0_3] : memref<32x16xbf16, #tpu.memory_space<vmem>>, vector<32x16xbf16>
    %cst = arith.constant dense<0.000000e+00> : vector<8x16xf32>
    %5 = tpu.matmul %3, %4, %cst {dimension_numbers = #tpu.dot_dimension_numbers<[1], [0], [0], [1], [0, 0, 1, 1], [], []>} : vector<8x32xbf16>, vector<32x16xbf16>, vector<8x16xf32> -> vector<8x16xf32>
    %6 = tpu.iota {dimensions = array<i32: 1>} : vector<8x16xi32>
    %c16_i32 = arith.constant 16 : i32
    %7 = arith.muli %arg1, %c16_i32 : i32
    %8 = vector.broadcast %7 : i32 to vector<8x16xi32>
    %9 = arith.addi %6, %8 : vector<8x16xi32>
    %c0_4 = arith.constant 0 : index
    %c0_5 = arith.constant 0 : index
    %10 = vector.load %arg4[%c0_4, %c0_5] : memref<8x1xi32, #tpu.memory_space<vmem>>, vector<8x1xi32>
    %11 = vector.broadcast %10 : vector<8x1xi32> to vector<8x16xi32>
    %12 = arith.cmpi eq, %9, %11 : vector<8x16xi32>
    %cst_6 = arith.constant 1.400000e+00 : f32
    %cst_7 = arith.constant 0.000000e+00 : f32
    %13 = vector.broadcast %cst_6 : f32 to vector<8x16xf32>
    %14 = vector.broadcast %cst_7 : f32 to vector<8x16xf32>
    %15 = arith.select %12, %13, %14 : vector<8x16xi1>, vector<8x16xf32>
    %c0_8 = arith.constant 0 : index
    %c0_9 = arith.constant 0 : index
    %16 = vector.load %arg5[%c0_8, %c0_9] : memref<8x16xf32, #tpu.memory_space<vmem>>, vector<8x16xf32>
    tpu.vector_store %arg5[%c0_8, %c0_9], %5 {strides = array<i32>} : memref<8x16xf32, #tpu.memory_space<vmem>>, vector<8x16xf32>,
    %cst_10 = arith.constant 7.000000e+00 : f32
    %17 = vector.broadcast %cst_10 : f32 to vector<8x16xf32>
    %18 = arith.mulf %17, %5 : vector<8x16xf32>
    %19 = arith.subf %18, %15 : vector<8x16xf32>
    %c0_11 = arith.constant 0 : index
    %c0_12 = arith.constant 0 : index
    %20 = vector.load %arg6[%c0_11, %c0_12] : memref<8x16xf32, #tpu.memory_space<vmem>>, vector<8x16xf32>
    tpu.vector_store %arg6[%c0_11, %c0_12], %19 {strides = array<i32>} : memref<8x16xf32, #tpu.memory_space<vmem>>, vector<8x16xf32>,
    return
  }
  func.func @transform_0(%arg0: i32, %arg1: i32) -> (i32, i32) {
    %c0_i32 = arith.constant 0 : i32
    %c0_i32_0 = arith.constant 0 : i32
    return %arg0, %c0_i32 : i32, i32
  }
  func.func @transform_1(%arg0: i32, %arg1: i32) -> (i32, i32) {
    %c0_i32 = arith.constant 0 : i32
    %c0_i32_0 = arith.constant 0 : i32
    return %c0_i32, %arg1 : i32, i32
  }
  func.func @transform_2(%arg0: i32, %arg1: i32) -> (i32, i32) {
    %c0_i32 = arith.constant 0 : i32
    %c0_i32_0 = arith.constant 0 : i32
    return %arg0, %c0_i32 : i32, i32
  }
  func.func @transform_3(%arg0: i32, %arg1: i32) -> (i32, i32) {
    %c0_i32 = arith.constant 0 : i32
    return %arg0, %arg1 : i32, i32
  }
  func.func @transform_4(%arg0: i32, %arg1: i32) -> (i32, i32) {
    %c0_i32 = arith.constant 0 : i32
    return %arg0, %arg1 : i32, i32
  }
}

</mosaic_0001>

<bundles_post_ra>
// kernel: tpu_custom_call.1
= control target key start
LH: loop header
LB: loop body
LE: loop exit
PB: predicated region body
PF: predicated region fallthrough
CT: control target
= control target key end

     0   :  { %10 = vsyncpa [#allocation4], 0  ;;  %vm25_vm0 = vcmask 261120   ;;  %s244_s0 = inlined_call_operand.vmem [shape: f32[8,32], index: 0, kind: input, shape index: {}]   ;;  %s245_s1 = inlined_call_operand.vmem [shape: bf16[32,16], index: 1, kind: input, shape index: {}]   ;;  %s246_s2 = inlined_call_operand.vmem [shape: s32[8,1], index: 2, kind: input, shape index: {}]   ;;  %s247_s3 = inlined_call_operand.hbm [shape: f32[8,16], index: 3, kind: output, shape index: {0}]   ;;  %s248_s4 = inlined_call_operand.hbm [shape: f32[8,16], index: 4, kind: output, shape index: {1}]  }
   0x1   :  { %v23_v0 = vld [vmem:[%s244_s0] sm:$0xff] }
   0x2   :  { %11 = vsyncpa [#allocation6], 0  ;;  %v24_v1 = vmul.f32 %v23_v0, %v23_v0  ;;  %v135_v3 = vld [vmem:[%s245_s1 + $0x8] sm:$0xff]  ;;  %v134_v4 = vld [vmem:[%s245_s1] sm:$0xff]  ;;  %v195_v7 = vmov 0   ;;  %vm41_vm4 = vcmask 257024   ;;  %v77_v18 = vlaneseq }
   0x3   :  { %70 = vmatpush.bf16.msra.mxu0 %v135_v3  ;;  %v82_v5 = vld [vmem:[%s246_s2] sm:$0xff]  ;;  %140 = vset.pattern.permute.xlu0 %v195_v7  ;;  %s196_s0 = smov [#allocation3]   ;;  %s100_s24 = sshll.u32 %s247_s3, 4  ;;  %vm88_vm6 = vcmask 130048   ;;  %v197_v22 = vmov 0.0   ;;  %s101_s24 = int_to_ptr.hbm [resolvable:$true] %s100_s24 }
   0x4   :  { %v26_v2 = vsel %vm25_vm0, %v24_v1, 0.0  ;;  %v78_v19 = vand.u32 127, %v77_v18  ;;  %s98_s1 = sshll.u32 %s196_s0, 4  ;;  %s198_s25 = smov [#allocation5]   ;;  %s99_s1 = int_to_ptr.vmem [resolvable:$true] %s98_s1 }
   0x5   :  { %27 = vadd.xlane.f32.xlu0 %v26_v2  ;;  %s109_s26 = sshll.u32 %s198_s25, 4  ;;  %s111_s29 = sshll.u32 %s248_s4, 4  ;;  %s110_s26 = int_to_ptr.vmem [resolvable:$true] %s109_s26  ;;  %s112_s29 = int_to_ptr.hbm [resolvable:$true] %s111_s29 }
   0x7   :  { %71 = vmatpush.bf16.msra.mxu0 %v134_v4 }
  0x19   :  { %84 = vperm.xlu0 %140, %v82_v5  }
  0x78   :  { %v28_v6 = vpop.xlane.xlu0 %27 }
  0x79   :  { %141 = vrsqrt.f32 %v28_v6  ;;  %vm35_vm2 = vweird.f32 %v28_v6 }
  0x7f   :  { %v142_v8 = vpop.eup %141 }
  0x80   :  { %v30_v9 = vmul.f32 %v142_v8, %v28_v6  ;;  %vm36_vm1 = vweird.f32 %v142_v8 }
  0x81   :  { %vm37_vm3 = vmor %vm35_vm2, %vm36_vm1 }
  0x82   :  { %v31_v10 = vmul.f32 %v142_v8, %v30_v9 }
  0x84   :  { %v32_v11 = vmul.f32 0.5, %v31_v10 }
  0x86   :  { %v33_v12 = vsub.f32 1.5, %v32_v11 }
  0x88   :  { %v34_v13 = vmul.f32 %v142_v8, %v33_v12 }
  0x8a   :  { %v38_v14 = vsel %vm37_vm3, %v142_v8, %v34_v13 }
  0x8b   :  { %v39_v15 = vmul.f32 %v38_v14, %v23_v0  ;;  %v85_v20 = vpop.permute.xlu0 %84 }
  0x8c   :  { %vm86_vm5 = vcmp.eq.s32.totalorder %v78_v19, %v85_v20 }
  0x8d   :  { %v40_v16 = vpack.c.bf16 %v39_v15, %v39_v15  ;;  %v87_v23 = vsel %vm86_vm5, 1.4, %v197_v22 }
  0x8f   :  { %42 = vst.msk [vmem:[#allocation2] sm:$0xf] %vm41_vm4, %v40_v16 }
  0x96   :  { %v43_v17 = vld [vmem:[#allocation2] sm:$0xf] }
  0x97   :  { %133 = vmatmul.msk.bf16.vlgmr.msra.gmra.mxu0 %vm25_vm0, %v43_v17 }
 0x114   :  { %v73_v21 = vpop.f32.mrf.mxu0 }
 0x115   :  { %v90_v24 = vmul.f32 7.0, %v73_v21  ;;  %89 = vst.msk [vmem:[#allocation3] sm:$0xff] %vm88_vm6, %v73_v21 }
 0x116   :  { %103 = dma.vmem_to_hbm [thread:$0]  %s99_s1, 128, %s101_s24, [#allocation4]  }
 0x117   :  { %v91_v25 = vsub.f32 %v90_v24, %v87_v23 }
 0x119   :  { %92 = vst.msk [vmem:[#allocation5] sm:$0xff] %vm88_vm6, %v91_v25 }
 0x11a   :  { %114 = dma.vmem_to_hbm [thread:$0]  %s110_s26, 128, %s112_s29, [#allocation6]  }
 0x11c   :  { %v75_v26 = vpop.f32.mrf.mxu0 }
 0x11d   :  { %191 = dma.done.wait [#allocation4], 128  }
 0x11e   :  { %192 = vsyncadd [#allocation4], 4294967168 }
 0x11f   :  { %193 = dma.done.wait [#allocation6], 128  }
 0x120   :  { %194 = vsyncadd [#allocation6], 4294967168 }
 0x121   :  { %123 = vsyncpa [#allocation4], 1 }
 0x122   :  { %124 = vsyncpa [#allocation6], 1 }

</bundles_post_ra>
